<compile_context>
chip_gen: v5e
topology: v5e:2x2
jax: 0.10.0
libtpu: 0.0.40
codegen_flags: <defaults>
</compile_context>

<pallas_src>
import jax
import jax.numpy as jnp
from jax.experimental import pallas as pl
from jax.experimental.pallas import tpu as pltpu

_LANE = 128
_GROUP_BLOCKS = 4                     # 4 x 128 = 512 lanes folded per pl.loop step
_GROUP = _LANE * _GROUP_BLOCKS


def _hint(v, m):
    """pl.multiple_of hint for traced offsets; pass static ints through untouched."""
    return v if isinstance(v, int) else pl.multiple_of(v, m)


def _make_kernel(hw: int, t_hw: int, n_tiles: int, out_c: int):
    """Build the kernel with HW / tile geometry baked in as compile-time constants."""
    rem = hw - (n_tiles - 1) * t_hw          # valid lanes in the last tile (1..t_hw)
    last_ragged = rem != t_hw
    inv_hw = 1.0 / float(hw)

    # static decomposition of a full tile: 512-lane groups + leftover 128-lane blocks
    full_groups = t_hw // _GROUP
    full_rem_blocks = (t_hw % _GROUP) // _LANE

    # static decomposition of the last (possibly ragged) tile
    last_full_blocks = rem // _LANE
    last_partial = rem % _LANE
    last_groups = last_full_blocks // _GROUP_BLOCKS
    last_rem_blocks = last_full_blocks % _GROUP_BLOCKS

    def kernel(x_ref, w1_ref, w2_ref, o_ref, sum_acc, max_acc):
        # x_ref  : (C, T_HW) spatial tile of batch element b (leading dim squeezed)
        # w1_ref : (C_mid, C)  fc1 weight (1x1 conv, no bias) -- resident
        # w2_ref : (C, C_mid)  fc2 weight (1x1 conv, no bias) -- resident
        # o_ref  : (1, 1, C)   per-batch-row output block (written at last step)
        # sum_acc, max_acc : (C, 128) f32 VMEM scratch (lane-wide running partials)
        j = pl.program_id(1)
        n_j = pl.num_programs(1)

        @pl.when(j == 0)
        def _init():
            sum_acc[...] = jnp.zeros(sum_acc.shape, sum_acc.dtype)
            max_acc[...] = jnp.full(max_acc.shape, -jnp.inf, dtype=max_acc.dtype)

        def accum_span(base, nblk):
            """Fold `nblk` consecutive, fully-valid 128-lane blocks into the accumulators."""
            off = _hint(base, _LANE)
            b = x_ref[:, pl.ds(off, _LANE)].astype(jnp.float32)      # (C, 128)
            s, m = b, b
            for u in range(1, nblk):                                  # static unroll
                off = _hint(base + u * _LANE, _LANE)
                b = x_ref[:, pl.ds(off, _LANE)].astype(jnp.float32)
                s = s + b
                m = jnp.maximum(m, b)
            sum_acc[...] += s
            max_acc[...] = jnp.maximum(max_acc[...], m)

        def accum_groups(n_groups, rem_blocks):
            if n_groups > 0:
                @pl.loop(0, n_groups)
                def _(g):
                    accum_span(pl.multiple_of(g * _GROUP, _GROUP), _GROUP_BLOCKS)
            if rem_blocks > 0:
                accum_span(n_groups * _GROUP, rem_blocks)

        def accum_full_tile():
            accum_groups(full_groups, full_rem_blocks)

        def accum_last_tile():
            # fully-valid 128-lane blocks of the last tile: unmasked fast path
            accum_groups(last_groups, last_rem_blocks)
            # single partial block (if HW is not a multiple of 128): masked
            if last_partial > 0:
                off = last_full_blocks * _LANE
                blk = x_ref[:, pl.ds(off, _LANE)].astype(jnp.float32)
                lane = jax.lax.broadcasted_iota(jnp.int32, blk.shape, 1)
                valid = lane < last_partial
                sum_acc[...] += jnp.where(valid, blk, 0.0)
                max_acc[...] = jnp.maximum(max_acc[...],
                                           jnp.where(valid, blk, -jnp.inf))

        if not last_ragged:
            # every tile is full-width: single unmasked path
            accum_full_tile()
        elif n_tiles == 1:
            # only one (ragged) tile: only the masked path exists
            accum_last_tile()
        else:
            # masking gated to the last spatial tile only
            @pl.when(j < n_j - 1)
            def _full():
                accum_full_tile()

            @pl.when(j == n_j - 1)
            def _last():
                accum_last_tile()

        @pl.when(j == n_j - 1)
        def _finalize():
            # single cross-lane fold of the lane-wide partials (once per batch row)
            avg = jnp.sum(sum_acc[...], axis=-1) * inv_hw             # (C,)
            mx = jnp.max(max_acc[...], axis=-1)                       # (C,)
            w1 = w1_ref[...].astype(jnp.float32)                      # (C_mid, C)
            w2 = w2_ref[...].astype(jnp.float32)                      # (C, C_mid)

            # fc2(relu(fc1(avg))) + fc2(relu(fc1(max))) == fc2(relu(fc1(avg)) + relu(fc1(max)))
            h = (jnp.maximum(jnp.sum(w1 * avg[None, :], axis=-1), 0.0)
                 + jnp.maximum(jnp.sum(w1 * mx[None, :], axis=-1), 0.0))   # (C_mid,)
            y = jnp.sum(w2 * h[None, :], axis=-1)                          # (C,)

            o_ref[...] = jax.nn.sigmoid(y).reshape(1, 1, out_c).astype(o_ref.dtype)

    return kernel


def _padded_rows(c, dtype):
    """Physical sublane footprint of a (C, .) VMEM block: f32 pads C to 8, bf16 to 16, int8 to 32."""
    itemsize = jnp.dtype(dtype).itemsize
    pack = max(1, 4 // itemsize)
    sub = 8 * pack
    return ((c + sub - 1) // sub) * sub


def _pick_spatial_tile(c, hw, dtype, target_block_bytes=8 << 20):
    """Pick a lane-axis tile (multiple of 128): ~8 MiB per x block, accounting for sublane
    padding. Double-buffered this stays well under the 32 MiB scoped VMEM we request."""
    itemsize = jnp.dtype(dtype).itemsize
    c_pad = _padded_rows(c, dtype)
    hw_pad = ((hw + _LANE - 1) // _LANE) * _LANE
    if c_pad * hw_pad * itemsize <= target_block_bytes:
        return hw_pad                                # whole image fits in one tile
    t = target_block_bytes // (c_pad * itemsize)
    t = max(_LANE, (t // _LANE) * _LANE)             # multiple of 128 lanes
    return min(t, hw_pad)


def channel_attention(x, w1, w2, *, t_hw=None):
    """x: (B, C, H, W); w1: (C_mid, C); w2: (C, C_mid) -> (B, C, 1, 1) of x.dtype."""
    B, C, H, W = x.shape
    C_mid = w1.shape[0]
    HW = H * W
    x_flat = x.reshape(B, C, HW)                     # keep input dtype (bf16 stays bf16)

    if t_hw is None:
        t_hw = _pick_spatial_tile(C, HW, x_flat.dtype)
    else:
        t_hw = max(_LANE, ((t_hw + _LANE - 1) // _LANE) * _LANE)
    n_tiles = pl.cdiv(HW, t_hw)

    block_bytes = _padded_rows(C, x_flat.dtype) * t_hw * jnp.dtype(x_flat.dtype).itemsize
    vmem_limit = int(max(32 * 1024 * 1024, 2 * block_bytes + 4 * 1024 * 1024))

    out = pl.pallas_call(
        _make_kernel(hw=HW, t_hw=t_hw, n_tiles=n_tiles, out_c=C),
        out_shape=jax.ShapeDtypeStruct((B, 1, C), x.dtype),
        grid_spec=pltpu.PrefetchScalarGridSpec(
            num_scalar_prefetch=0,
            grid=(B, n_tiles),
            in_specs=[
                # one spatial tile of one batch element per step; batch dim squeezed away
                pl.BlockSpec((pl.Squeezed(), C, t_hw), lambda b, j: (b, 0, j)),
                # small weights: full block, constant index -> stays resident
                pl.BlockSpec((C_mid, C), lambda b, j: (0, 0)),
                pl.BlockSpec((C, C_mid), lambda b, j: (0, 0)),
            ],
            # per-batch-row output block, resident across the spatial (reduction) axis
            out_specs=pl.BlockSpec((1, 1, C), lambda b, j: (b, 0, 0)),
            scratch_shapes=[
                pltpu.VMEM((C, _LANE), jnp.float32),   # lane-wide running sum
                pltpu.VMEM((C, _LANE), jnp.float32),   # lane-wide running max
            ],
        ),
        compiler_params=pltpu.CompilerParams(
            # batch axis can be sharded across TensorCores; spatial axis is the reduction
            dimension_semantics=("parallel", "arbitrary"),
            vmem_limit_bytes=vmem_limit,
        ),
    )(x_flat, w1, w2)

    return out.reshape(B, C, 1, 1)


def channel_attention_ref(x, w1, w2):
    """Pure-JAX reference matching the PyTorch forward."""
    avg = jnp.mean(x, axis=(2, 3))                  # (B, C)
    mx = jnp.max(x, axis=(2, 3))                    # (B, C)

    def mlp(p):                                     # fc2(relu(fc1(p)))
        h = jnp.maximum(p @ w1.T, 0.0)              # (B, C_mid)
        return h @ w2.T                             # (B, C)

    out = jax.nn.sigmoid(mlp(avg) + mlp(mx))        # (B, C)
    return out[:, :, None, None]                    # (B, C, 1, 1)


if __name__ == "__main__":
    key = jax.random.PRNGKey(0)
    kx, k1, k2, kx2, k1b, k2b, kx3, k1c, k2c = jax.random.split(key, 9)

    # --- Test 1: module-sized shapes (single-tile path), f32 -----------------------
    B, C, H, W = 2, 4, 16, 16
    C_mid = 1 if C // 16 == 0 else C // 16          # matches the module's __init__
    x = jax.random.normal(kx, (B, C, H, W), dtype=jnp.float32)
    # Conv2d(in, out, 1, bias=False) weights, squeezed from (out, in, 1, 1) to (out, in)
    w1 = jax.random.normal(k1, (C_mid, C), dtype=jnp.float32) * 0.5
    w2 = jax.random.normal(k2, (C, C_mid), dtype=jnp.float32) * 0.5

    out = jax.block_until_ready(channel_attention(x, w1, w2))
    ref = channel_attention_ref(x, w1, w2)
    assert out.shape == (B, C, 1, 1), out.shape
    assert jnp.allclose(out, ref, atol=1e-5, rtol=1e-5)

    # --- Test 2: tiled spatial axis with ragged tail (HW=400, T_HW=128) ------------
    B2, C2, H2, W2 = 2, 8, 20, 20
    C2_mid = 1 if C2 // 16 == 0 else C2 // 16
    x2 = jax.random.normal(kx2, (B2, C2, H2, W2), dtype=jnp.float32)
    w1b = jax.random.normal(k1b, (C2_mid, C2), dtype=jnp.float32) * 0.5
    w2b = jax.random.normal(k2b, (C2, C2_mid), dtype=jnp.float32) * 0.5

    out2 = jax.block_until_ready(channel_attention(x2, w1b, w2b, t_hw=128))
    ref2 = channel_attention_ref(x2, w1b, w2b)
    assert jnp.allclose(out2, ref2, atol=1e-5, rtol=1e-5)

    # --- Test 3: bf16 input path (dtype preserved in HBM, f32 accumulation in-kernel)
    x_bf16 = x.astype(jnp.bfloat16)
    out3 = jax.block_until_ready(channel_attention(x_bf16, w1, w2))
    ref3 = channel_attention_ref(x_bf16.astype(jnp.float32), w1, w2)
    assert out3.dtype == jnp.bfloat16
    assert jnp.allclose(out3.astype(jnp.float32), ref3, atol=2e-2, rtol=2e-2)

    # --- Test 4: larger C, grouped 512-lane loop + ragged tail (HW=1600, T_HW=512) --
    B3, C3, H3, W3 = 2, 32, 40, 40
    C3_mid = 1 if C3 // 16 == 0 else C3 // 16
    x3 = jax.random.normal(kx3, (B3, C3, H3, W3), dtype=jnp.float32)
    w1c = jax.random.normal(k1c, (C3_mid, C3), dtype=jnp.float32) * 0.25
    w2c = jax.random.normal(k2c, (C3, C3_mid), dtype=jnp.float32) * 0.25

    out4 = jax.block_until_ready(channel_attention(x3, w1c, w2c, t_hw=512))
    ref4 = channel_attention_ref(x3, w1c, w2c)
    assert jnp.allclose(out4, ref4, atol=1e-4, rtol=1e-4)

    print("KERNEL_OK")
</pallas_src>

<mosaic_0001>
module attributes {stable_mosaic.version = 11 : i64} {
  func.func @kernel(%arg0: i32, %arg1: i32, %arg2: memref<1x4x256xf32, #tpu.memory_space<vmem>>, %arg3: memref<1x4xf32, #tpu.memory_space<vmem>>, %arg4: memref<4x1xf32, #tpu.memory_space<vmem>>, %arg5: memref<1x1x4xf32, #tpu.memory_space<vmem>>, %arg6: memref<4x128xf32, #tpu.memory_space<vmem>>, %arg7: memref<4x128xf32, #tpu.memory_space<vmem>>) attributes {dimension_semantics = [#tpu.dimension_semantics<parallel>, #tpu.dimension_semantics<arbitrary>], iteration_bounds = array<i64: 2, 1>, scalar_prefetch = 0 : i64, scratch_operands = 2 : i64, tpu.core_type = #tpu.core_type<tc>, window_params = [{transform_indices = @transform_0, window_bounds = array<i64: 1, 4, 256>}, {pipeline_mode = #tpu.pipeline_mode<synchronous>, transform_indices = @transform_1, window_bounds = array<i64: 1, 4>}, {pipeline_mode = #tpu.pipeline_mode<synchronous>, transform_indices = @transform_2, window_bounds = array<i64: 4, 1>}, {transform_indices = @transform_3, window_bounds = array<i64: 1, 1, 4>}]} {
    %c0_i32 = arith.constant 0 : i32
    %0 = arith.cmpi eq, %arg1, %c0_i32 : i32
    %1 = arith.extui %0 : i1 to i32
    %c0_i32_0 = arith.constant 0 : i32
    %2 = arith.cmpi ne, %1, %c0_i32_0 : i32
    scf.if %2 {
      %cst = arith.constant 0.000000e+00 : f32
      %18 = vector.broadcast %cst : f32 to vector<4x128xf32>
      %c0_15 = arith.constant 0 : index
      %c0_16 = arith.constant 0 : index
      %19 = vector.load %arg6[%c0_15, %c0_16] : memref<4x128xf32, #tpu.memory_space<vmem>>, vector<4x128xf32>
      tpu.vector_store %arg6[%c0_15, %c0_16], %18 {strides = array<i32>} : memref<4x128xf32, #tpu.memory_space<vmem>>, vector<4x128xf32>,
      %cst_17 = arith.constant 0xFF800000 : f32
      %20 = vector.broadcast %cst_17 : f32 to vector<4x128xf32>
      %c0_18 = arith.constant 0 : index
      %c0_19 = arith.constant 0 : index
      %21 = vector.load %arg7[%c0_18, %c0_19] : memref<4x128xf32, #tpu.memory_space<vmem>>, vector<4x128xf32>
      tpu.vector_store %arg7[%c0_18, %c0_19], %20 {strides = array<i32>} : memref<4x128xf32, #tpu.memory_space<vmem>>, vector<4x128xf32>,
    } else {
    }
    %c0 = arith.constant 0 : index
    %c0_1 = arith.constant 0 : index
    %c0_2 = arith.constant 0 : index
    %3 = vector.load %arg2[%c0, %c0_1, %c0_2] : memref<1x4x256xf32, #tpu.memory_space<vmem>>, vector<1x4x128xf32>
    %4 = vector.shape_cast %3 : vector<1x4x128xf32> to vector<4x128xf32>
    %c0_3 = arith.constant 0 : index
    %c0_4 = arith.constant 0 : index
    %c128 = arith.constant 128 : index
    %5 = vector.load %arg2[%c0_3, %c0_4, %c128] : memref<1x4x256xf32, #tpu.memory_space<vmem>>, vector<1x4x128xf32>
    %6 = vector.shape_cast %5 : vector<1x4x128xf32> to vector<4x128xf32>
    %7 = arith.addf %4, %6 : vector<4x128xf32>
    %8 = arith.maximumf %4, %6 : vector<4x128xf32>
    %c0_5 = arith.constant 0 : index
    %c0_6 = arith.constant 0 : index
    %9 = vector.load %arg6[%c0_5, %c0_6] : memref<4x128xf32, #tpu.memory_space<vmem>>, vector<4x128xf32>
    %10 = arith.addf %9, %7 : vector<4x128xf32>
    %c0_7 = arith.constant 0 : index
    %c0_8 = arith.constant 0 : index
    %11 = vector.load %arg6[%c0_7, %c0_8] : memref<4x128xf32, #tpu.memory_space<vmem>>, vector<4x128xf32>
    tpu.vector_store %arg6[%c0_7, %c0_8], %10 {strides = array<i32>} : memref<4x128xf32, #tpu.memory_space<vmem>>, vector<4x128xf32>,
    %c0_9 = arith.constant 0 : index
    %c0_10 = arith.constant 0 : index
    %12 = vector.load %arg7[%c0_9, %c0_10] : memref<4x128xf32, #tpu.memory_space<vmem>>, vector<4x128xf32>
    %13 = arith.maximumf %12, %8 : vector<4x128xf32>
    %c0_11 = arith.constant 0 : index
    %c0_12 = arith.constant 0 : index
    %14 = vector.load %arg7[%c0_11, %c0_12] : memref<4x128xf32, #tpu.memory_space<vmem>>, vector<4x128xf32>
    tpu.vector_store %arg7[%c0_11, %c0_12], %13 {strides = array<i32>} : memref<4x128xf32, #tpu.memory_space<vmem>>, vector<4x128xf32>,
    %c0_i32_13 = arith.constant 0 : i32
    %15 = arith.cmpi eq, %arg1, %c0_i32_13 : i32
    %16 = arith.extui %15 : i1 to i32
    %c0_i32_14 = arith.constant 0 : i32
    %17 = arith.cmpi ne, %16, %c0_i32_14 : i32
    scf.if %17 {
      %c0_15 = arith.constant 0 : index
      %c0_16 = arith.constant 0 : index
      %18 = vector.load %arg6[%c0_15, %c0_16] : memref<4x128xf32, #tpu.memory_space<vmem>>, vector<4x128xf32>
      %cst = arith.constant dense<0.000000e+00> : vector<4xf32>
      %19 = vector.multi_reduction <add>, %18, %cst [1] : vector<4x128xf32> to vector<4xf32>
      %cst_17 = arith.constant 3.906250e-03 : f32
      %20 = vector.broadcast %cst_17 : f32 to vector<4xf32>
      %21 = arith.mulf %19, %20 : vector<4xf32>
      %c0_18 = arith.constant 0 : index
      %c0_19 = arith.constant 0 : index
      %22 = vector.load %arg7[%c0_18, %c0_19] : memref<4x128xf32, #tpu.memory_space<vmem>>, vector<4x128xf32>
      %cst_20 = arith.constant dense<0xFF800000> : vector<4xf32>
      %23 = vector.multi_reduction <maximumf>, %22, %cst_20 [1] : vector<4x128xf32> to vector<4xf32>
      %c0_21 = arith.constant 0 : index
      %c0_22 = arith.constant 0 : index
      %24 = vector.load %arg3[%c0_21, %c0_22] : memref<1x4xf32, #tpu.memory_space<vmem>>, vector<1x4xf32>
      %c0_23 = arith.constant 0 : index
      %c0_24 = arith.constant 0 : index
      %25 = vector.load %arg4[%c0_23, %c0_24] : memref<4x1xf32, #tpu.memory_space<vmem>>, vector<4x1xf32>
      %26 = vector.shape_cast %21 : vector<4xf32> to vector<1x4xf32>
      %27 = arith.mulf %24, %26 : vector<1x4xf32>
      %cst_25 = arith.constant dense<0.000000e+00> : vector<1xf32>
      %28 = vector.multi_reduction <add>, %27, %cst_25 [1] : vector<1x4xf32> to vector<1xf32>
      %cst_26 = arith.constant 0.000000e+00 : f32
      %29 = vector.broadcast %cst_26 : f32 to vector<1xf32>
      %30 = arith.maximumf %28, %29 : vector<1xf32>
      %31 = vector.shape_cast %23 : vector<4xf32> to vector<1x4xf32>
      %32 = arith.mulf %24, %31 : vector<1x4xf32>
      %cst_27 = arith.constant dense<0.000000e+00> : vector<1xf32>
      %33 = vector.multi_reduction <add>, %32, %cst_27 [1] : vector<1x4xf32> to vector<1xf32>
      %cst_28 = arith.constant 0.000000e+00 : f32
      %34 = vector.broadcast %cst_28 : f32 to vector<1xf32>
      %35 = arith.maximumf %33, %34 : vector<1xf32>
      %36 = arith.addf %30, %35 : vector<1xf32>
      %37 = vector.shape_cast %36 : vector<1xf32> to vector<1x1xf32>
      %38 = vector.broadcast %37 : vector<1x1xf32> to vector<4x1xf32>
      %39 = arith.mulf %25, %38 : vector<4x1xf32>
      %cst_29 = arith.constant dense<0.000000e+00> : vector<4xf32>
      %40 = vector.multi_reduction <add>, %39, %cst_29 [1] : vector<4x1xf32> to vector<4xf32>
      %41 = arith.negf %40 : vector<4xf32>
      %42 = math.exp %41 : vector<4xf32>
      %cst_30 = arith.constant 1.000000e+00 : f32
      %43 = vector.broadcast %cst_30 : f32 to vector<4xf32>
      %44 = arith.addf %43, %42 : vector<4xf32>
      %45 = arith.divf %43, %44 : vector<4xf32>
      %46 = vector.shape_cast %45 : vector<4xf32> to vector<1x1x4xf32>
      %c0_31 = arith.constant 0 : index
      %c0_32 = arith.constant 0 : index
      %c0_33 = arith.constant 0 : index
      %47 = vector.load %arg5[%c0_31, %c0_32, %c0_33] : memref<1x1x4xf32, #tpu.memory_space<vmem>>, vector<1x1x4xf32>
      tpu.vector_store %arg5[%c0_31, %c0_32, %c0_33], %46 {strides = array<i32>} : memref<1x1x4xf32, #tpu.memory_space<vmem>>, vector<1x1x4xf32>,
    } else {
    }
    return
  }
  func.func @transform_0(%arg0: i32, %arg1: i32) -> (i32, i32, i32) {
    %c0_i32 = arith.constant 0 : i32
    %c0_i32_0 = arith.constant 0 : i32
    return %arg0, %c0_i32, %arg1 : i32, i32, i32
  }
  func.func @transform_1(%arg0: i32, %arg1: i32) -> (i32, i32) {
    %c0_i32 = arith.constant 0 : i32
    %c0_i32_0 = arith.constant 0 : i32
    %c0_i32_1 = arith.constant 0 : i32
    return %c0_i32, %c0_i32_0 : i32, i32
  }
  func.func @transform_2(%arg0: i32, %arg1: i32) -> (i32, i32) {
    %c0_i32 = arith.constant 0 : i32
    %c0_i32_0 = arith.constant 0 : i32
    %c0_i32_1 = arith.constant 0 : i32
    return %c0_i32, %c0_i32_0 : i32, i32
  }
  func.func @transform_3(%arg0: i32, %arg1: i32) -> (i32, i32, i32) {
    %c0_i32 = arith.constant 0 : i32
    %c0_i32_0 = arith.constant 0 : i32
    %c0_i32_1 = arith.constant 0 : i32
    return %arg0, %c0_i32, %c0_i32_0 : i32, i32, i32
  }
}

</mosaic_0001>

<bundles_post_ra>
// kernel: tpu_custom_call.1
= control target key start
LH: loop header
LB: loop body
LE: loop exit
PB: predicated region body
PF: predicated region fallthrough
CT: control target
= control target key end

     0   :  { %8 = vsyncpa [#allocation5], 0  ;;  %s756_s0 = inlined_call_operand.hbm [shape: f32[2,4,256], index: 0, kind: input, shape index: {}]   ;;  %s757_s1 = inlined_call_operand.vmem [shape: f32[1,4], index: 1, kind: input, shape index: {}]   ;;  %s758_s2 = inlined_call_operand.vmem [shape: f32[4,1], index: 2, kind: input, shape index: {}]   ;;  %s759_s3 = inlined_call_operand.hbm [shape: f32[2,1,4], index: 3, kind: output, shape index: {}]  }
   0x1   :  { %10 = vsyncpa [#allocation5 + $0x1], 0 }
   0x2   :  { %11 = vsyncpa [#allocation6], 0 }
   0x3   :  { %13 = vsyncpa [#allocation6 + $0x1], 0  ;;  %s626_s12 = smov 0   ;;  %s628_s13 = smov 0  }
   0x4   :  { %s630_s14 = smov 0   ;;  %s632_s15 = smov 0  }
   0x5   :  { %s634_s16 = smov 0   ;;  %s636_s17 = smov 0  }
   0x6 LB: > { %s405_s18 = sadd.s32 4294967295, %s601_s17   ;;  %s406_s19 = sadd.s32 4294967294, %s601_s17   ;;  %s601_s17 = sphi %s636_s17, %s19_s17   ;;  %s597_s16 = sphi %s634_s16, %s768_s16   ;;  %s593_s15 = sphi %s632_s15, %s767_s15   ;;  %s589_s14 = sphi %s630_s14, %s766_s14   ;;  %s585_s13 = sphi %s628_s13, %s765_s13   ;;  %s581_s12 = sphi %s626_s12, %s764_s12  }
   0x7   : > { %s31_s20 = sadd.s32 1, %s597_s16  ;;  %s40_s21 = sadd.s32 1, %s589_s14 }
   0x8   : > { %p33_p0 = scmp.ge.s32.totalorder %s31_s20, 2  ;;  %p47_p1 = scmp.ne.s32.totalorder %s589_s14, %s585_s13 }
   0x9   : > { %p48_p2 = scmp.eq.s32.totalorder %s601_s17, 0  ;;  %p53_p3 = scmp.ne.s32.totalorder %s585_s13, %s581_s12 }
   0xa   : > { %s770_s20 = smov (%p33_p0, %s31_s20), 0  ;;  %p54_p5 = scmp.eq.s32.totalorder %s405_s18, 0 }
   0xb   : > { %p667_p4 = por %p48_p2, %p47_p1  ;;  %s35_s23 = ssub.s32 %s597_s16, %s770_s20 }
   0xc   : > { %p119_p6 = scmp.eq.s32.totalorder %s405_s18, 1  ;;  %p38_p7 = scmp.eq.s32.totalorder %s35_s23, 0 }
   0xd   : > { %p673_p8 = por %p54_p5, %p53_p3  ;;  %p125_p10 = scmp.eq.s32.totalorder %s406_s19, 1 }
   0xe   : > { %p677_p9 = por %p119_p6, %p47_p1  ;;  %p408_p12 = scmp.ge.s32.totalorder %s601_s17, 2 }
   0xf   : > { %s682_s26 = scalar_select %p38_p7, %s589_s14, %s40_s21  }
  0x10   : > { %p684_p11 = por %p125_p10, %p53_p3  ;;  %p430_p13 = scmp.lt.s32.totalorder %s601_s17, 2 }
  0x11   : > { %s151_s28 = sand.u32 1, %s589_s14   ;;  %s417_s30 = sshll.u32 %s597_s16, 3 }
  0x12   : > { %s409_s29 = sshll.u32 %s151_s28, 3  ;;  %s162_s6 = scalar_lea.hbm %s756_s0, %s417_s30 }
  0x13   : > { %s155_s7 = scalar_lea.vmem [#allocation4], %s409_s29  ;;  %s164_s9 = sshll.u32 %s162_s6, 4  ;;  %s165_s9 = int_to_ptr.hbm [resolvable:$true] %s164_s9 }
  0x14   : > { %s166_s8 = sshll.u32 %s155_s7, 4  ;;  %p423_p0 = pnand %p430_p13, %p667_p4  ;;  %s167_s8 = int_to_ptr.vmem [resolvable:$true] %s166_s8 }
  0x15   : > { %p412_p1 = scmp.ge.s32.totalorder %s601_s17, 1  ;;  %p171_p2 = scmp.lt.s32.totalorder %s601_s17, 3 }
  0x16   : > { %s152_s10 = scalar_lea.sflag [#allocation5], %s151_s28 }
  0x17   : > { %425 = dma.hbm_to_vmem [thread:$0]  (!%p423_p0), %s165_s9, 128, %s167_s8, %s152_s10  }
  0x18   : > { %p172_p3 = pnand %p412_p1, %p171_p2 }
  0x19   : > { %s700_s11 = sand.u32 (!%p172_p3), 1, %s585_s13  }
  0x1a   : > { %175 = sbr.rel (%p172_p3) target bundleno = 586 (0x24a), region = 32  ;;  %s413_s18 = sshll.u32 (!%p172_p3), %s700_s11, 3 }
  0x1b   : > { %s178_s19 = scalar_lea.sflag (!%p172_p3), [#allocation5], %s700_s11  ;;  %s181_s21 = scalar_lea.vmem (!%p172_p3), [#allocation4], %s413_s18 }
  0x1f   : > { %572 = dma.done.wait (%p673_p8), %s178_s19, 128  }
  0x20   : > { %574 = vsyncadd (%p673_p8), %s178_s19, 4294967168  ;;  %v603_v0 = vmov 0.0   ;;  %v604_v1 = vmov -inf   ;;  %v211_v2 = vld [vmem:[%s181_s21] sm:$0xf]  ;;  %vm225_vm0 = vcmask 1043456   ;;  %v252_v28 = vlaneseq  ;;  %s324_s4 = scalar_lea.hbm %s759_s3, %s593_s15 }
  0x21   : > { %209 = vst [vmem:[#allocation2] sm:$0xf] %v603_v0  ;;  %v212_v3 = vld [vmem:[%s181_s21 + $0x4] sm:$0xf]  ;;  %v605_v14 = vmov 0   ;;  %vm257_vm1 = vcmask 24576  }
  0x22   : > { %210 = vst [vmem:[#allocation3] sm:$0xf] %v604_v1  ;;  %v213_v4 = vadd.f32 %v212_v3, %v211_v2  ;;  %v214_v6 = vmax.f32 %v211_v2, %v212_v3  ;;  %483 = vset.pattern.permute.xlu1 %v605_v14  ;;  %484 = vset.pattern.permute.xlu0 %v605_v14  ;;  %v253_v29 = vand.u32 127, %v252_v28  ;;  %v234_v31 = vld [vmem:[%s757_s1] sm:$0x1]  ;;  %s203_s5 = scalar_lea.vmem [#allocation7], %s700_s11 }
  0x23   : > { %v235_v44 = vld [vmem:[%s758_s2] sm:$0xf]  ;;  %s326_s6 = sshll.u32 %s203_s5, 4  ;;  %s328_s7 = sshll.u32 %s324_s4, 4  ;;  %s327_s6 = int_to_ptr.vmem [resolvable:$true] %s326_s6  ;;  %s329_s7 = int_to_ptr.hbm [resolvable:$true] %s328_s7 }
  0x24   : > { %s316_s8 = scalar_lea.sflag [#allocation6], %s700_s11  ;;  %s533_s9 = sshra.s32 %s329_s7, 4  ;;  %s534_s9 = int_to_ptr.hbm [resolvable:$true] %s533_s9 }
  0x25   : > { %s535_s10 = scalar_lea.hbm %s534_s9, 1  ;;  %s539_s15 = scalar_lea.hbm %s759_s3, 2 }
  0x26   : > { %p536_p4 = scmp.ne.s32.totalorder %s534_s9, %s535_s10  ;;  %p540_p7 = scmp.lt.s32.totalorder %s534_s9, %s759_s3 }
  0x27   : > { %p541_p8 = scmp.lt.s32.totalorder %s539_s15, %s535_s10 }
  0x28   : > { %v215_v5 = vld [vmem:[#allocation2] sm:$0xf]  ;;  %p537_p5 = pnand %p536_p4, %p677_p9 }
  0x29   : > { %v218_v7 = vld [vmem:[#allocation3] sm:$0xf]  ;;  %v216_v8 = vadd.f32 %v215_v5, %v213_v4  ;;  %p542_p10 = por %p541_p8, %p540_p7 }
  0x2a   : > { %v219_v9 = vmax.f32 %v218_v7, %v214_v6  ;;  %p538_p6 = pneg %p537_p5 }
  0x2b   : > { %217 = vst [vmem:[#allocation2] sm:$0xf] %v216_v8 }
  0x2c   : > { %220 = vst [vmem:[#allocation3] sm:$0xf] %v219_v9  ;;  %p543_p13 = pnand %p542_p10, %p538_p6 }
  0x32   : > { %v224_v10 = vld [vmem:[#allocation2] sm:$0xf] }
  0x33   : > { %v226_v11 = vsel %vm225_vm0, %v224_v10, 0.0  ;;  %v230_v12 = vld [vmem:[#allocation3] sm:$0xf] }
  0x34   : > { %227 = vadd.xlane.f32.xlu0 %v226_v11  ;;  %v231_v13 = vsel %vm225_vm0, %v230_v12, -inf }
  0x3c   : > { %232 = vmax.xlane.f32.xlu0 %v231_v13 }
  0xa7   : > { %v228_v15 = vpop.xlane.xlu0 %227 }
  0xa8   : > { %v229_v16 = vmul.f32 0.00390625, %v228_v15 }
  0xaa   : > { %v237_v17 = vperm.slane %v229_v16, 0  ;;  %v238_v18 = vperm.slane %v229_v16, 1  ;;  %v239_v19 = vperm.slane %v229_v16, 2  ;;  %v240_v20 = vperm.slane %v229_v16, 3 }
  0xac   : > { %241 = vst [vmem:[#allocation1] ss:$9 sm:$0xff] %v237_v17 }
  0xad   : > { %243 = vst [vmem:[#allocation1 + $0x1] ss:$9 sm:$0xff] %v238_v18 }
  0xae   : > { %245 = vst [vmem:[#allocation1 + $0x2] ss:$9 sm:$0xff] %v239_v19 }
  0xaf   : > { %247 = vst [vmem:[#allocation1 + $0x3] ss:$9 sm:$0xff] %v240_v20  ;;  %v233_v21 = vpop.xlane.xlu0 %232 }
  0xb0   : > { %v263_v22 = vperm.slane %v233_v21, 0  ;;  %v264_v23 = vperm.slane %v233_v21, 1  ;;  %v265_v24 = vperm.slane %v233_v21, 2  ;;  %v266_v25 = vperm.slane %v233_v21, 3 }
  0xb6   : > { %v248_v26 = vld [vmem:[#allocation1] sm:$0xff] }
  0xb7   : > { %250 = vperm.xlu1 %483, %v248_v26   ;;  %267 = vst [vmem:[#allocation1] ss:$9 sm:$0xff] %v263_v22 }
  0xb8   : > { %269 = vst [vmem:[#allocation1 + $0x1] ss:$9 sm:$0xff] %v264_v23 }
  0xb9   : > { %271 = vst [vmem:[#allocation1 + $0x2] ss:$9 sm:$0xff] %v265_v24 }
  0xba   : > { %273 = vst [vmem:[#allocation1 + $0x3] ss:$9 sm:$0xff] %v266_v25 }
  0xc1   : > { %v274_v27 = vld [vmem:[#allocation1] sm:$0xff] }
  0xc2   : > { %276 = vperm.xlu1 %483, %v274_v27  }
 0x129   : > { %v251_v30 = vpop.permute.xlu1 %250 }
 0x12a   : > { %v254_v32 = vperm.slane %v251_v30, %v253_v29 }
 0x12c   : > { %v256_v33 = vmul.f32 %v254_v32, %v234_v31 }
 0x12e   : > { %v258_v34 = vsel %vm257_vm1, %v256_v33, 0.0 }
 0x12f   : > { %259 = vadd.xlane.f32.xlu2 %v258_v34 }
 0x134   : > { %v277_v35 = vpop.permute.xlu1 %276 }
 0x135   : > { %v278_v36 = vperm.slane %v277_v35, %v253_v29 }
 0x137   : > { %v280_v37 = vmul.f32 %v278_v36, %v234_v31 }
 0x139   : > { %v281_v38 = vsel %vm257_vm1, %v280_v37, 0.0 }
 0x13a   : > { %282 = vadd.xlane.f32.xlu2 %v281_v38 }
 0x1a2   : > { %v260_v39 = vpop.xlane.xlu2 %259 }
 0x1a3   : > { %v261_v41 = vmax.f32 %v260_v39, 0.0 }
 0x1ad   : > { %v283_v40 = vpop.xlane.xlu2 %282 }
 0x1ae   : > { %v284_v42 = vmax.f32 %v283_v40, 0.0 }
 0x1b0   : > { %v285_v43 = vadd.f32 %v284_v42, %v261_v41 }
 0x1b2   : > { %v286_v45 = vperm.slane %v285_v43, 0 }
 0x1b4   : > { %v287_v46 = vmul.f32 %v286_v45, %v235_v44 }
 0x1b6   : > { %v414_v47 = vmul.f32 -1.442695, %v287_v46 }
 0x1b8   : > { %485 = vpow2.f32 %v414_v47 }
 0x1be   : > { %v486_v48 = vpop.eup %485 }
 0x1bf   : > { %v292_v49 = vadd.f32 1.0, %v486_v48 }
 0x1c1   : > { %487 = vrcp.f32 %v292_v49  ;;  %v304_v53 = vand.u32 2147483648, %v292_v49  ;;  %v302_v55 = vand.u32 2147483647, %v292_v49  ;;  %vm298_vm3 = vweird.f32 %v292_v49 }
 0x1c3   : > { %v305_v57 = vor.u32 1.1754944e-38, %v304_v53  ;;  %vm303_vm5 = vcmp.eq.f32.partialorder %v302_v55, 8.507059e+37 }
 0x1c7   : > { %v488_v50 = vpop.eup %487 }
 0x1c8   : > { %v294_v51 = vmul.f32 %v488_v50, %v292_v49  ;;  %vm299_vm2 = vweird.f32 %v488_v50 }
 0x1c9   : > { %vm300_vm4 = vmor %vm298_vm3, %vm299_vm2 }
 0x1ca   : > { %v295_v52 = vsub.f32 1.0, %v294_v51 }
 0x1cc   : > { %v296_v54 = vmul.f32 %v488_v50, %v295_v52 }
 0x1ce   : > { %v297_v56 = vadd.f32 %v488_v50, %v296_v54 }
 0x1d0   : > { %v301_v58 = vsel %vm300_vm4, %v488_v50, %v297_v56 }
 0x1d1   : > { %v306_v59 = vsel %vm303_vm5, %v305_v57, %v301_v58 }
 0x1d2   : > { %310 = vperm.xlu0 %484, %v306_v59  }
 0x244   : > { %v311_v60 = vpop.permute.xlu0 %310 }
 0x245   : > { %v312_v61 = vperm.slane %v311_v60, %v253_v29 }
 0x247   : > { %314 = vst.msk [vmem:[%s203_s5] sm:$0x1] %vm257_vm1, %v312_v61 }
 0x248   : > { %546 = shalt.err (!%p543_p13)
}
 0x249   : > { %420 = dma.vmem_to_hbm [thread:$0]  (%p677_p9), %s327_s6, 16, %s329_s7, %s316_s8  }
 0x24a PF: > { %s340_s11 = sand.u32 1, %s581_s12   ;;  %p427_p0 = pnand %p408_p12, %p684_p11 }
 0x24b   : > { %s341_s23 = scalar_lea.sflag [#allocation6], %s340_s11 }
 0x24c   : > { %p428_p1 = pneg %p427_p0 }
 0x24e   : > { %576 = dma.done.wait (%p428_p1), %s341_s23, 16  }
 0x24f   : > { %578 = vsyncadd (%p428_p1), %s341_s23, 4294967280  ;;  %s19_s17 = sadd.s32 1, %s601_s17   ;;  %s764_s12 = smov %s585_s13 }
 0x250   : > { %p16_p2 = scmp.ge.s32.totalorder %s19_s17, 4   ;;  %s765_s13 = smov %s589_s14 }
 0x251   : > { %s766_s14 = smov %s682_s26  ;;  %s767_s15 = smov %s597_s16 }
 0x252   : > { %s768_s16 = smov %s770_s20  ;;  %18 = sbr.rel (!%p16_p2) target bundleno = 6 (0x6), region = 91 }
 0x257   :  { %346 = vsyncpa [#allocation5], 1 }
 0x258   :  { %348 = vsyncpa [#allocation5 + $0x1], 1 }
 0x259   :  { %349 = vsyncpa [#allocation6], 1 }
 0x25a   :  { %351 = vsyncpa [#allocation6 + $0x1], 1 }

</bundles_post_ra>
